<compile_context>
chip_gen: v5e
topology: v5e:2x2
jax: 0.10.0
libtpu: 0.0.40
codegen_flags: <defaults>
</compile_context>

<pallas_src>
import functools

import jax
import jax.numpy as jnp
from jax.experimental import pallas as pl
from jax.experimental.pallas import tpu as pltpu


def _cdiv(a, b):
    return -(-a // b)


def _round_up(x, m):
    return ((x + m - 1) // m) * m


def _neg_dist_kernel(fm_ref, fp_ref, out_ref, acc_ref, *, k, rows_per_step, chunk):
    """Grid step: (R, D) model rows vs (R, D) pointcloud rows -> accumulate relu(dist)."""
    o = pl.program_id(0)
    i = pl.program_id(1)
    n_inner = pl.num_programs(1)

    @pl.when(i == 0)
    def _init():
        acc_ref[...] = jnp.zeros_like(acc_ref)

    # Global row offset of this grid step (for masking the padded tail).
    row_base = (o * n_inner + i) * rows_per_step
    # Hoisted once per step (don't re-broadcast inside the loop).
    local_iota = jax.lax.broadcasted_iota(jnp.int32, (chunk, 1), 0)

    n_chunks = rows_per_step // chunk

    @pl.loop(0, n_chunks, unroll=True)
    def _per_chunk(c):
        r0 = pl.multiple_of(c * chunk, chunk)
        fm = fm_ref[pl.ds(r0, chunk), :].astype(jnp.float32)
        fp = fp_ref[pl.ds(r0, chunk), :].astype(jnp.float32)
        diff = fp - fm
        sq_sum = jnp.sum(diff * diff, axis=-1, keepdims=True)   # (chunk, 1) XLU reduce
        dist = jnp.sqrt(sq_sum)                                  # (chunk, 1) EUP
        # relu(L2 distance) is a no-op (sqrt >= 0); kept for fidelity with the module.
        dist = jnp.maximum(dist, 0.0)
        rows = row_base + r0 + local_iota
        # Mask padded-tail rows exactly (padded indices gather real rows -> finite values).
        acc_ref[...] += jnp.where(rows < k, dist, 0.0)

    # Cheap (chunk x 1) copy every step; final step leaves the full partial sum.
    out_ref[...] = acc_ref[...]


def negative_contrastive_loss(features_model, features_pointcloud,
                              negative_indices, neg_coef, *,
                              block_rows=2048, chunk_rows=128):
    """Pallas implementation of NegativeContrastiveLoss.forward."""
    n_model, d = features_model.shape
    n_pc, d2 = features_pointcloud.shape
    assert d == d2
    k = int(negative_indices.shape[0])
    assert k >= 1
    itemsize = jnp.dtype(features_model.dtype).itemsize

    # Sub-chunk rows processed per inner iteration: keep live f32 temporaries
    # (diff, diff*diff) within the 64-vreg file (~16 KiB of f32 per operand chunk).
    c = max(8, min(int(chunk_rows), (16384 // max(d, 1)) // 8 * 8))

    # Rows per grid step: multiple of c, capped so 2 inputs x 2 pipeline buffers
    # fit a conservative VMEM budget, and capped by the (rounded-up) problem size.
    vmem_budget = 16 * 1024 * 1024
    max_r = max(c, (vmem_budget // (4 * d * itemsize)) // c * c)
    r = min(int(block_rows), max_r)
    r = max(c, (r // c) * c)
    r = min(r, _round_up(k, c))
    r = max(c, (r // c) * c)

    # Split blocks over (parallel outer, arbitrary inner): outer feeds both
    # v7x TensorCores, inner carries the VMEM-resident accumulator.
    n_blocks = _cdiv(k, r)
    n_outer = min(n_blocks, 4)
    n_inner = _cdiv(n_blocks, n_outer)
    n_outer = _cdiv(n_blocks, n_inner)   # trim wasted fully-padded blocks
    k_pad = n_outer * n_inner * r

    # Column 0 indexes features_model, column 1 indexes features_pointcloud.
    idx_m = negative_indices[:, 0].astype(jnp.int32)
    idx_p = negative_indices[:, 1].astype(jnp.int32)
    pad = k_pad - k
    if pad:
        # Pad the tiny index vectors (valid index 0), NOT the gathered (K, D) arrays.
        idx_m = jnp.pad(idx_m, (0, pad))
        idx_p = jnp.pad(idx_p, (0, pad))

    # Wrapper-side gather: one contiguous XLA gather per table, original dtype kept.
    fm_g = jnp.take(features_model, idx_m, axis=0)        # (k_pad, D)
    fp_g = jnp.take(features_pointcloud, idx_p, axis=0)   # (k_pad, D)

    kernel = functools.partial(_neg_dist_kernel, k=k, rows_per_step=r, chunk=c)

    cost = pl.CostEstimate(
        flops=3 * k_pad * d,                                   # sub + mul + add-reduce
        transcendentals=k_pad,                                 # one sqrt per row
        bytes_accessed=2 * k_pad * d * itemsize + n_outer * c * 4,
    )

    partial_sums = pl.pallas_call(
        kernel,
        grid=(n_outer, n_inner),
        in_specs=[
            pl.BlockSpec((r, d), lambda o, i: (o * n_inner + i, 0)),   # model rows
            pl.BlockSpec((r, d), lambda o, i: (o * n_inner + i, 0)),   # pointcloud rows
        ],
        out_specs=pl.BlockSpec((c, 1), lambda o, i: (o, 0)),           # per-outer partials
        out_shape=jax.ShapeDtypeStruct((n_outer * c, 1), jnp.float32),
        scratch_shapes=[pltpu.VMEM((c, 1), jnp.float32)],              # resident accumulator
        compiler_params=pltpu.CompilerParams(
            dimension_semantics=("parallel", "arbitrary"),
            vmem_limit_bytes=32 * 1024 * 1024,
        ),
        cost_estimate=cost,
    )(fm_g, fp_g)

    # Tiny final reduction (n_outer * c values) + loss in the wrapper.
    return jnp.float32(neg_coef) - jnp.sum(partial_sums) / jnp.float32(k)


def _reference(features_model, features_pointcloud, negative_indices, neg_coef):
    f1 = features_pointcloud[negative_indices[:, 1]]
    f2 = features_model[negative_indices[:, 0]]
    dist = jnp.sqrt(jnp.sum((f1.astype(jnp.float32) - f2.astype(jnp.float32)) ** 2,
                            axis=-1))
    return neg_coef - jnp.mean(jnp.maximum(dist, 0.0))


if __name__ == "__main__":
    key = jax.random.PRNGKey(0)
    neg_coef = 1.0   # FeatureConfig.neg_coef

    # Case 1: tiny, K not a multiple of 8 -> exercises index padding + tail mask.
    k1, k2, k3, k4 = jax.random.split(key, 4)
    n_model, n_pc, d, k_pairs = 16, 24, 128, 10
    fm = jax.random.normal(k1, (n_model, d), dtype=jnp.float32)
    fp = jax.random.normal(k2, (n_pc, d), dtype=jnp.float32)
    neg_idx = jnp.stack(
        [jax.random.randint(k3, (k_pairs,), 0, n_model),
         jax.random.randint(k4, (k_pairs,), 0, n_pc)], axis=1)
    loss = jax.block_until_ready(
        negative_contrastive_loss(fm, fp, neg_idx, neg_coef))
    ref = _reference(fm, fp, neg_idx, neg_coef)
    assert jnp.allclose(loss, ref, atol=1e-5, rtol=1e-5), (loss, ref)

    # Case 2: multiple blocks (small block_rows) -> exercises 2-D grid, inner
    # accumulation and outer-parallel partial sums.
    k5, k6, k7, k8 = jax.random.split(jax.random.PRNGKey(1), 4)
    n_model2, n_pc2, k_pairs2 = 32, 48, 700
    fm2 = jax.random.normal(k5, (n_model2, d), dtype=jnp.float32)
    fp2 = jax.random.normal(k6, (n_pc2, d), dtype=jnp.float32)
    neg_idx2 = jnp.stack(
        [jax.random.randint(k7, (k_pairs2,), 0, n_model2),
         jax.random.randint(k8, (k_pairs2,), 0, n_pc2)], axis=1)
    loss2 = jax.block_until_ready(
        negative_contrastive_loss(fm2, fp2, neg_idx2, neg_coef, block_rows=128))
    ref2 = _reference(fm2, fp2, neg_idx2, neg_coef)
    assert jnp.allclose(loss2, ref2, atol=1e-5, rtol=1e-5), (loss2, ref2)

    print("KERNEL_OK")
</pallas_src>

<mosaic_0001>
module attributes {stable_mosaic.version = 11 : i64} {
  func.func @_neg_dist_kernel(%arg0: i32, %arg1: i32, %arg2: memref<128x128xf32, #tpu.memory_space<vmem>>, %arg3: memref<128x128xf32, #tpu.memory_space<vmem>>, %arg4: memref<128x1xf32, #tpu.memory_space<vmem>>, %arg5: memref<128x1xf32, #tpu.memory_space<vmem>>) attributes {dimension_semantics = [#tpu.dimension_semantics<parallel>, #tpu.dimension_semantics<arbitrary>], iteration_bounds = array<i64: 1, 1>, scalar_prefetch = 0 : i64, scratch_operands = 1 : i64, tpu.core_type = #tpu.core_type<tc>, window_params = [{transform_indices = @transform_0, window_bounds = array<i64: 128, 128>}, {transform_indices = @transform_1, window_bounds = array<i64: 128, 128>}, {transform_indices = @transform_2, window_bounds = array<i64: 128, 1>}]} {
    %c0_i32 = arith.constant 0 : i32
    %0 = arith.cmpi eq, %arg1, %c0_i32 : i32
    %1 = arith.extui %0 : i1 to i32
    %c0_i32_0 = arith.constant 0 : i32
    %2 = arith.cmpi ne, %1, %c0_i32_0 : i32
    scf.if %2 {
      %cst_17 = arith.constant 0.000000e+00 : f32
      %34 = vector.broadcast %cst_17 : f32 to vector<128x1xf32>
      %c0_18 = arith.constant 0 : index
      %c0_19 = arith.constant 0 : index
      %35 = vector.load %arg5[%c0_18, %c0_19] : memref<128x1xf32, #tpu.memory_space<vmem>>, vector<128x1xf32>
      tpu.vector_store %arg5[%c0_18, %c0_19], %34 {strides = array<i32>} : memref<128x1xf32, #tpu.memory_space<vmem>>, vector<128x1xf32>,
    } else {
    }
    %c1_i32 = arith.constant 1 : i32
    %3 = arith.muli %arg0, %c1_i32 : i32
    %4 = arith.addi %3, %arg1 : i32
    %c128_i32 = arith.constant 128 : i32
    %5 = arith.muli %4, %c128_i32 : i32
    %6 = tpu.iota {dimensions = array<i32: 0>} : vector<128x1xi32>
    %c0_i32_1 = arith.constant 0 : i32
    %c1_i32_2 = arith.constant 1 : i32
    %7 = arith.muli %c0_i32_1, %c1_i32_2 : i32
    %c0_i32_3 = arith.constant 0 : i32
    %8 = arith.addi %c0_i32_3, %7 : i32
    %c128_i32_4 = arith.constant 128 : i32
    %9 = arith.muli %8, %c128_i32_4 : i32
    %10 = tpu.assume_multiple %9, 128 : i32
    %11 = arith.index_cast %10 : i32 to index
    %c0 = arith.constant 0 : index
    %12 = vector.load %arg2[%11, %c0] : memref<128x128xf32, #tpu.memory_space<vmem>>, vector<128x128xf32>
    %13 = arith.index_cast %10 : i32 to index
    %c0_5 = arith.constant 0 : index
    %14 = vector.load %arg3[%13, %c0_5] : memref<128x128xf32, #tpu.memory_space<vmem>>, vector<128x128xf32>
    %15 = arith.subf %14, %12 : vector<128x128xf32>
    %16 = arith.mulf %15, %15 : vector<128x128xf32>
    %cst = arith.constant dense<0.000000e+00> : vector<128xf32>
    %17 = vector.multi_reduction <add>, %16, %cst [1] : vector<128x128xf32> to vector<128xf32>
    %18 = vector.shape_cast %17 : vector<128xf32> to vector<128x1xf32>
    %19 = math.sqrt %18 : vector<128x1xf32>
    %cst_6 = arith.constant 0.000000e+00 : f32
    %20 = vector.broadcast %cst_6 : f32 to vector<128x1xf32>
    %21 = arith.maximumf %19, %20 : vector<128x1xf32>
    %22 = arith.addi %5, %10 : i32
    %23 = vector.broadcast %22 : i32 to vector<128x1xi32>
    %24 = arith.addi %23, %6 : vector<128x1xi32>
    %c0_7 = arith.constant 0 : index
    %c0_8 = arith.constant 0 : index
    %25 = vector.load %arg5[%c0_7, %c0_8] : memref<128x1xf32, #tpu.memory_space<vmem>>, vector<128x1xf32>
    %c10_i32 = arith.constant 10 : i32
    %26 = vector.broadcast %c10_i32 : i32 to vector<128x1xi32>
    %27 = arith.cmpi slt, %24, %26 : vector<128x1xi32>
    %cst_9 = arith.constant 0.000000e+00 : f32
    %28 = vector.broadcast %cst_9 : f32 to vector<128x1xf32>
    %29 = arith.select %27, %21, %28 : vector<128x1xi1>, vector<128x1xf32>
    %30 = arith.addf %25, %29 : vector<128x1xf32>
    %c0_10 = arith.constant 0 : index
    %c0_11 = arith.constant 0 : index
    %31 = vector.load %arg5[%c0_10, %c0_11] : memref<128x1xf32, #tpu.memory_space<vmem>>, vector<128x1xf32>
    tpu.vector_store %arg5[%c0_10, %c0_11], %30 {strides = array<i32>} : memref<128x1xf32, #tpu.memory_space<vmem>>, vector<128x1xf32>,
    %c1_i32_12 = arith.constant 1 : i32
    %c0_13 = arith.constant 0 : index
    %c0_14 = arith.constant 0 : index
    %32 = vector.load %arg5[%c0_13, %c0_14] : memref<128x1xf32, #tpu.memory_space<vmem>>, vector<128x1xf32>
    %c0_15 = arith.constant 0 : index
    %c0_16 = arith.constant 0 : index
    %33 = vector.load %arg4[%c0_15, %c0_16] : memref<128x1xf32, #tpu.memory_space<vmem>>, vector<128x1xf32>
    tpu.vector_store %arg4[%c0_15, %c0_16], %32 {strides = array<i32>} : memref<128x1xf32, #tpu.memory_space<vmem>>, vector<128x1xf32>,
    return
  }
  func.func @transform_0(%arg0: i32, %arg1: i32) -> (i32, i32) {
    %c1_i32 = arith.constant 1 : i32
    %0 = arith.muli %arg0, %c1_i32 : i32
    %1 = arith.addi %0, %arg1 : i32
    %c0_i32 = arith.constant 0 : i32
    %c0_i32_0 = arith.constant 0 : i32
    return %1, %c0_i32 : i32, i32
  }
  func.func @transform_1(%arg0: i32, %arg1: i32) -> (i32, i32) {
    %c1_i32 = arith.constant 1 : i32
    %0 = arith.muli %arg0, %c1_i32 : i32
    %1 = arith.addi %0, %arg1 : i32
    %c0_i32 = arith.constant 0 : i32
    %c0_i32_0 = arith.constant 0 : i32
    return %1, %c0_i32 : i32, i32
  }
  func.func @transform_2(%arg0: i32, %arg1: i32) -> (i32, i32) {
    %c0_i32 = arith.constant 0 : i32
    %c0_i32_0 = arith.constant 0 : i32
    return %arg0, %c0_i32 : i32, i32
  }
}

</mosaic_0001>

<bundles_post_ra>
// kernel: tpu_custom_call.1
= control target key start
LH: loop header
LB: loop body
LE: loop exit
PB: predicated region body
PF: predicated region fallthrough
CT: control target
= control target key end

     0   :  { %7 = vsyncpa [#allocation4], 0  ;;  %s719_s0 = inlined_call_operand.hbm [shape: f32[128,128], index: 0, kind: input, shape index: {}]   ;;  %s720_s1 = inlined_call_operand.hbm [shape: f32[128,128], index: 1, kind: input, shape index: {}]   ;;  %s721_s2 = inlined_call_operand.vmem [shape: f32[128,1], index: 2, kind: output, shape index: {}]  }
   0x1   :  { %s17_s11 = sshll.u32 %s719_s0, 4  ;;  %s18_s11 = int_to_ptr.hbm [resolvable:$true] %s17_s11 }
   0x2   :  { %8 = vsyncpa [#allocation6], 0  ;;  %s597_s12 = smov [#allocation3]   ;;  %s34_s16 = sshll.u32 %s720_s1, 4  ;;  %s35_s16 = int_to_ptr.hbm [resolvable:$true] %s34_s16 }
   0x3   :  { %s19_s13 = sshll.u32 %s597_s12, 4  ;;  %s598_s17 = smov 128   ;;  %s20_s13 = int_to_ptr.vmem [resolvable:$true] %s19_s13 }
   0x4   :  { %s599_s18 = smov 8   ;;  %s600_s19 = smov [#allocation5]  }
   0x5   :  { %25 = dma.hbm_to_vmem [thread:$0]  %s18_s11, 2048, %s20_s13, [#allocation4], %s598_s17, %s598_s17, %s599_s18  }
   0x6   :  { %s36_s20 = sshll.u32 %s600_s19, 4  ;;  %s37_s20 = int_to_ptr.vmem [resolvable:$true] %s36_s20 }
   0x7   :  { %42 = dma.hbm_to_vmem [thread:$0]  %s35_s16, 2048, %s37_s20, [#allocation6], %s598_s17, %s598_s17, %s599_s18  }
   0x8   :  { %593 = dma.done.wait [#allocation4], 2048  }
   0x9   :  { %594 = vsyncadd [#allocation4], 4294965248 }
   0xa   :  { %595 = dma.done.wait [#allocation6], 2048  }
   0xb   :  { %596 = vsyncadd [#allocation6], 4294965248  ;;  %vm59_vm0 = vcmask 7168   ;;  %v601_v0 = vmov 0.0   ;;  %v96_v1 = vld [vmem:[#allocation3 + $0x8] sm:$0xff]  ;;  %v95_v4 = vld [vmem:[#allocation3] sm:$0xff]  ;;  %v78_v34 = vlaneseq }
   0xc   :  { %61 = vst.msk [vmem:[#allocation2 + $0x8] sm:$0xff] %vm59_vm0, %v601_v0  ;;  %v112_v2 = vld [vmem:[#allocation5 + $0x8] sm:$0xff]  ;;  %v111_v5 = vld [vmem:[#allocation5] sm:$0xff] }
   0xd   :  { %62 = vst.msk [vmem:[#allocation2 + $0x10] sm:$0xff] %vm59_vm0, %v601_v0  ;;  %v128_v3 = vsub.f32 %v112_v2, %v96_v1  ;;  %v127_v7 = vsub.f32 %v111_v5, %v95_v4  ;;  %v79_v41 = vshrl.u32 %v78_v34, 7 }
   0xe   :  { %63 = vst.msk [vmem:[#allocation2 + $0x18] sm:$0xff] %vm59_vm0, %v601_v0 }
   0xf   :  { %64 = vst.msk [vmem:[#allocation2 + $0x20] sm:$0xff] %vm59_vm0, %v601_v0  ;;  %v144_v6 = vmul.f32 %v128_v3, %v128_v3  ;;  %v143_v8 = vmul.f32 %v127_v7, %v127_v7  ;;  %v80_v49 = vadd.s32 8, %v79_v41 }
  0x10   :  { %65 = vst.msk [vmem:[#allocation2 + $0x28] sm:$0xff] %vm59_vm0, %v601_v0 }
  0x11   :  { %66 = vst.msk [vmem:[#allocation2 + $0x30] sm:$0xff] %vm59_vm0, %v601_v0  ;;  %161 = vadd.xlane.f32.xlu0 %v144_v6  ;;  %vm434_vm3 = vcmp.lt.s32.totalorder %v80_v49, 10 }
  0x12   :  { %67 = vst.msk [vmem:[#allocation2 + $0x38] sm:$0xff] %vm59_vm0, %v601_v0 }
  0x13   :  { %68 = vst.msk [vmem:[#allocation2 + $0x40] sm:$0xff] %vm59_vm0, %v601_v0  ;;  %v418_v57 = vld [vmem:[#allocation2 + $0x8] sm:$0xff] }
  0x14   :  { %69 = vst.msk [vmem:[#allocation2 + $0x48] sm:$0xff] %vm59_vm0, %v601_v0  ;;  %v419_v9 = vld [vmem:[#allocation2 + $0x10] sm:$0xff] }
  0x15   :  { %70 = vst.msk [vmem:[#allocation2 + $0x50] sm:$0xff] %vm59_vm0, %v601_v0  ;;  %v420_v10 = vld [vmem:[#allocation2 + $0x18] sm:$0xff] }
  0x16   :  { %71 = vst.msk [vmem:[#allocation2 + $0x58] sm:$0xff] %vm59_vm0, %v601_v0  ;;  %v421_v11 = vld [vmem:[#allocation2 + $0x20] sm:$0xff] }
  0x17   :  { %72 = vst.msk [vmem:[#allocation2 + $0x60] sm:$0xff] %vm59_vm0, %v601_v0  ;;  %v422_v12 = vld [vmem:[#allocation2 + $0x28] sm:$0xff] }
  0x18   :  { %73 = vst.msk [vmem:[#allocation2 + $0x68] sm:$0xff] %vm59_vm0, %v601_v0  ;;  %v423_v13 = vld [vmem:[#allocation2 + $0x30] sm:$0xff] }
  0x19   :  { %74 = vst.msk [vmem:[#allocation2 + $0x70] sm:$0xff] %vm59_vm0, %v601_v0  ;;  %159 = vadd.xlane.f32.xlu0 %v143_v8  ;;  %v424_v14 = vld [vmem:[#allocation2 + $0x38] sm:$0xff] }
  0x1a   :  { %75 = vst.msk [vmem:[#allocation2 + $0x78] sm:$0xff] %vm59_vm0, %v601_v0  ;;  %v425_v15 = vld [vmem:[#allocation2 + $0x40] sm:$0xff] }
  0x1b   :  { %60 = vst.msk [vmem:[#allocation2] sm:$0xff] %vm59_vm0, %v601_v0  ;;  %v426_v16 = vld [vmem:[#allocation2 + $0x48] sm:$0xff] }
  0x1c   :  { %484 = vst.msk [vmem:[#allocation2 + $0x10] sm:$0xff] %vm59_vm0, %v419_v9  ;;  %v427_v17 = vld [vmem:[#allocation2 + $0x50] sm:$0xff] }
  0x1d   :  { %485 = vst.msk [vmem:[#allocation2 + $0x18] sm:$0xff] %vm59_vm0, %v420_v10  ;;  %v428_v18 = vld [vmem:[#allocation2 + $0x58] sm:$0xff] }
  0x1e   :  { %486 = vst.msk [vmem:[#allocation2 + $0x20] sm:$0xff] %vm59_vm0, %v421_v11  ;;  %v429_v19 = vld [vmem:[#allocation2 + $0x60] sm:$0xff] }
  0x1f   :  { %487 = vst.msk [vmem:[#allocation2 + $0x28] sm:$0xff] %vm59_vm0, %v422_v12  ;;  %v430_v20 = vld [vmem:[#allocation2 + $0x68] sm:$0xff] }
  0x20   :  { %488 = vst.msk [vmem:[#allocation2 + $0x30] sm:$0xff] %vm59_vm0, %v423_v13  ;;  %v431_v22 = vld [vmem:[#allocation2 + $0x70] sm:$0xff] }
  0x21   :  { %489 = vst.msk [vmem:[#allocation2 + $0x38] sm:$0xff] %vm59_vm0, %v424_v14  ;;  %v432_v23 = vld [vmem:[#allocation2 + $0x78] sm:$0xff] }
  0x22   :  { %490 = vst.msk [vmem:[#allocation2 + $0x40] sm:$0xff] %vm59_vm0, %v425_v15  ;;  %v417_v2 = vld [vmem:[#allocation2] sm:$0xff] }
  0x23   :  { %491 = vst.msk [vmem:[#allocation2 + $0x48] sm:$0xff] %vm59_vm0, %v426_v16  ;;  %v500_v24 = vld [vmem:[#allocation2 + $0x10] sm:$0xff] }
  0x24   :  { %492 = vst.msk [vmem:[#allocation2 + $0x50] sm:$0xff] %vm59_vm0, %v427_v17  ;;  %v501_v25 = vld [vmem:[#allocation2 + $0x18] sm:$0xff] }
  0x25   :  { %493 = vst.msk [vmem:[#allocation2 + $0x58] sm:$0xff] %vm59_vm0, %v428_v18  ;;  %v502_v26 = vld [vmem:[#allocation2 + $0x20] sm:$0xff] }
  0x26   :  { %494 = vst.msk [vmem:[#allocation2 + $0x60] sm:$0xff] %vm59_vm0, %v429_v19  ;;  %v503_v27 = vld [vmem:[#allocation2 + $0x28] sm:$0xff] }
  0x27   :  { %495 = vst.msk [vmem:[#allocation2 + $0x68] sm:$0xff] %vm59_vm0, %v430_v20  ;;  %v504_v28 = vld [vmem:[#allocation2 + $0x30] sm:$0xff] }
  0x28   :  { %496 = vst.msk [vmem:[#allocation2 + $0x70] sm:$0xff] %vm59_vm0, %v431_v22  ;;  %v505_v30 = vld [vmem:[#allocation2 + $0x38] sm:$0xff] }
  0x29   :  { %497 = vst.msk [vmem:[#allocation2 + $0x78] sm:$0xff] %vm59_vm0, %v432_v23  ;;  %v506_v32 = vld [vmem:[#allocation2 + $0x40] sm:$0xff] }
  0x2a   :  { %516 = vst.msk [vmem:[%s721_s2 + $0x10] sm:$0xff] %vm59_vm0, %v500_v24  ;;  %v507_v35 = vld [vmem:[#allocation2 + $0x48] sm:$0xff] }
  0x2b   :  { %517 = vst.msk [vmem:[%s721_s2 + $0x18] sm:$0xff] %vm59_vm0, %v501_v25  ;;  %v508_v37 = vld [vmem:[#allocation2 + $0x50] sm:$0xff] }
  0x2c   :  { %518 = vst.msk [vmem:[%s721_s2 + $0x20] sm:$0xff] %vm59_vm0, %v502_v26  ;;  %v509_v38 = vld [vmem:[#allocation2 + $0x58] sm:$0xff] }
  0x2d   :  { %519 = vst.msk [vmem:[%s721_s2 + $0x28] sm:$0xff] %vm59_vm0, %v503_v27  ;;  %v510_v40 = vld [vmem:[#allocation2 + $0x60] sm:$0xff] }
  0x2e   :  { %520 = vst.msk [vmem:[%s721_s2 + $0x30] sm:$0xff] %vm59_vm0, %v504_v28  ;;  %v511_v42 = vld [vmem:[#allocation2 + $0x68] sm:$0xff] }
  0x2f   :  { %521 = vst.msk [vmem:[%s721_s2 + $0x38] sm:$0xff] %vm59_vm0, %v505_v30  ;;  %v512_v44 = vld [vmem:[#allocation2 + $0x70] sm:$0xff] }
  0x30   :  { %522 = vst.msk [vmem:[%s721_s2 + $0x40] sm:$0xff] %vm59_vm0, %v506_v32  ;;  %v513_v46 = vld [vmem:[#allocation2 + $0x78] sm:$0xff] }
  0x31   :  { %523 = vst.msk [vmem:[%s721_s2 + $0x48] sm:$0xff] %vm59_vm0, %v507_v35 }
  0x32   :  { %524 = vst.msk [vmem:[%s721_s2 + $0x50] sm:$0xff] %vm59_vm0, %v508_v37 }
  0x33   :  { %525 = vst.msk [vmem:[%s721_s2 + $0x58] sm:$0xff] %vm59_vm0, %v509_v38 }
  0x34   :  { %526 = vst.msk [vmem:[%s721_s2 + $0x60] sm:$0xff] %vm59_vm0, %v510_v40 }
  0x35   :  { %527 = vst.msk [vmem:[%s721_s2 + $0x68] sm:$0xff] %vm59_vm0, %v511_v42 }
  0x36   :  { %528 = vst.msk [vmem:[%s721_s2 + $0x70] sm:$0xff] %vm59_vm0, %v512_v44 }
  0x37   :  { %529 = vst.msk [vmem:[%s721_s2 + $0x78] sm:$0xff] %vm59_vm0, %v513_v46 }
  0x84   :  { %v162_v21 = vpop.xlane.xlu0 %161 }
  0x85   :  { %541 = vrsqrt.f32 %v162_v21  ;;  %vm210_vm1 = vcmp.eq.f32.partialorder %v162_v21, inf  ;;  %v213_v52 = vand.u32 2147483648, %v162_v21  ;;  %vm212_vm2 = vcmp.eq.f32.partialorder %v162_v21, 0.0 }
  0x8b   :  { %v542_v29 = vpop.eup %541 }
  0x8c   :  { %v204_v31 = vmul.f32 %v542_v29, %v162_v21  ;;  %v160_v33 = vpop.xlane.xlu0 %159 }
  0x8d   :  { %543 = vrsqrt.f32 %v160_v33  ;;  %vm198_vm4 = vcmp.eq.f32.partialorder %v160_v33, inf  ;;  %v201_v63 = vand.u32 2147483648, %v160_v33  ;;  %vm200_vm5 = vcmp.eq.f32.partialorder %v160_v33, 0.0 }
  0x8e   :  { %v205_v36 = vmul.f32 %v542_v29, %v204_v31 }
  0x90   :  { %v206_v39 = vmul.f32 0.5, %v205_v36 }
  0x92   :  { %v207_v43 = vsub.f32 1.5, %v206_v39 }
  0x93   :  { %v544_v45 = vpop.eup %543 }
  0x94   :  { %v208_v47 = vmul.f32 %v542_v29, %v207_v43  ;;  %v192_v48 = vmul.f32 %v544_v45, %v160_v33 }
  0x96   :  { %v209_v50 = vmul.f32 %v208_v47, %v162_v21  ;;  %v193_v51 = vmul.f32 %v544_v45, %v192_v48 }
  0x98   :  { %v211_v53 = vsel %vm210_vm1, %v162_v21, %v209_v50  ;;  %v194_v54 = vmul.f32 0.5, %v193_v51 }
  0x99   :  { %v214_v55 = vsel %vm212_vm2, %v213_v52, %v211_v53 }
  0x9a   :  { %v384_v56 = vmax.f32 %v214_v55, 0.0  ;;  %v195_v58 = vsub.f32 1.5, %v194_v54 }
  0x9c   :  { %v450_v59 = vsel %vm434_vm3, %v384_v56, 0.0  ;;  %v196_v60 = vmul.f32 %v544_v45, %v195_v58 }
  0x9d   :  { %v466_v61 = vadd.f32 %v450_v59, %v418_v57 }
  0x9e   :  { %v197_v62 = vmul.f32 %v196_v60, %v160_v33 }
  0x9f   :  { %483 = vst.msk [vmem:[#allocation2 + $0x8] sm:$0xff] %vm59_vm0, %v466_v61 }
  0xa0   :  { %v199_v0 = vsel %vm198_vm4, %v160_v33, %v197_v62 }
  0xa1   :  { %v202_v1 = vsel %vm200_vm5, %v201_v63, %v199_v0 }
  0xa2   :  { %v383_v3 = vmax.f32 %v202_v1, 0.0 }
  0xa4   :  { %v465_v4 = vadd.f32 %v417_v2, %v383_v3 }
  0xa6   :  { %v499_v5 = vld [vmem:[#allocation2 + $0x8] sm:$0xff]  ;;  %482 = vst.msk [vmem:[#allocation2] sm:$0xff] %vm59_vm0, %v465_v4 }
  0xa7   :  { %515 = vst.msk [vmem:[%s721_s2 + $0x8] sm:$0xff] %vm59_vm0, %v499_v5 }
  0xad   :  { %v498_v6 = vld [vmem:[#allocation2] sm:$0xff] }
  0xae   :  { %514 = vst.msk [vmem:[%s721_s2] sm:$0xff] %vm59_vm0, %v498_v6 }
  0xaf   :  { %534 = vsyncpa [#allocation4], 1 }
  0xb0   :  { %535 = vsyncpa [#allocation6], 1 }

</bundles_post_ra>
